<compile_context>
chip_gen: v7x
topology: tpu7x:2x2x1
jax: 0.10.0
libtpu: 0.0.40
codegen_flags: <defaults>
</compile_context>

<pallas_src>
import jax
import jax.numpy as jnp
from jax import lax
from jax.experimental import pallas as pl
from jax.experimental.pallas import tpu as pltpu


LANES_WIDE = 1024   # lane-dense last dim (multiple of 128) -> unmasked vst
SUBLANES = 8        # minimal sublane tile for f32 (block row-tile granularity)


def _pick_tiling():
    """Per-generation (row_tile, vmem_limit_bytes) for (row_tile, 1024) blocks."""
    kind = ""
    try:
        kind = jax.devices()[0].device_kind.lower()
    except Exception:
        pass
    if "v6" in kind or "v7" in kind:
        # 4 MiB blocks; 2 in + 2 out double-buffered = 32 MiB in flight.
        # Explicit limit: above v6e's 32 MiB scoped default, under v7x's 64 MiB.
        return 1024, 48 * 1024 * 1024
    # v5e (16 MiB scoped-VMEM default) / unknown: 1 MiB blocks, 8 MiB in flight,
    # already ~85% of HBM roofline per the measured tile sweep.
    return 256, None


def _csigmoid_kernel(re_ref, im_ref, ore_ref, oim_ref):
    # sigmoid(x) == 0.5*tanh(0.5*x) + 0.5 : one EUP op per element, the rest
    # is VPU mul/add.  Kernel is HBM-bandwidth bound on all generations.
    ore_ref[...] = 0.5 * jnp.tanh(0.5 * re_ref[...]) + 0.5
    oim_ref[...] = 0.5 * jnp.tanh(0.5 * im_ref[...]) + 0.5


def _sigmoid_planes_2d(re2d, im2d):
    """Elementwise sigmoid over two f32[rows, LANES_WIDE] planes in one call."""
    rows, cols = re2d.shape
    assert cols == LANES_WIDE and im2d.shape == re2d.shape
    row_tile, vmem_limit = _pick_tiling()
    row_tile = min(row_tile, rows)         # small inputs: one exact block
    grid = (pl.cdiv(rows, row_tile),)      # partial trailing block is fine
    spec = pl.BlockSpec((row_tile, cols), lambda i: (i, 0))
    n_total = 2 * rows * cols

    params = dict(
        dimension_semantics=("parallel",),   # v7x: row blocks split across TCs
        allow_input_fusion=[True, True],     # fuse re/im extraction into operands
    )
    if vmem_limit is not None:
        params["vmem_limit_bytes"] = vmem_limit

    return pl.pallas_call(
        _csigmoid_kernel,
        out_shape=(
            jax.ShapeDtypeStruct((rows, cols), jnp.float32),
            jax.ShapeDtypeStruct((rows, cols), jnp.float32),
        ),
        grid_spec=pltpu.PrefetchScalarGridSpec(
            num_scalar_prefetch=0,
            grid=grid,
            in_specs=[spec, spec],
            out_specs=[spec, spec],
        ),
        compiler_params=pltpu.CompilerParams(**params),
        cost_estimate=pl.CostEstimate(
            flops=2 * n_total,            # mul + add per element
            transcendentals=n_total,      # one tanh per element
            bytes_accessed=2 * n_total * 4,
        ),
    )(re2d, im2d)


def _to_rows(plane_flat):
    """Pad a flat f32 vector to a multiple of LANES_WIDE and view as 2-D."""
    n = plane_flat.shape[0]
    n_pad = pl.cdiv(n, LANES_WIDE) * LANES_WIDE
    if n_pad != n:                        # skipped when already lane-divisible
        plane_flat = jnp.pad(plane_flat, (0, n_pad - n))
    return plane_flat.reshape(n_pad // LANES_WIDE, LANES_WIDE)


def _complex_linear_planar_impl(x_re, x_im):
    """Planar fast path: (real, imag) f32 in -> (sigmoid(real), sigmoid(imag))."""
    shape = x_re.shape
    n = x_re.size
    re2d = _to_rows(x_re.reshape(-1).astype(jnp.float32))
    im2d = _to_rows(x_im.reshape(-1).astype(jnp.float32))
    y_re2d, y_im2d = _sigmoid_planes_2d(re2d, im2d)
    y_re = y_re2d.reshape(-1)[:n].reshape(shape)
    y_im = y_im2d.reshape(-1)[:n].reshape(shape)
    return y_re, y_im


def _complex_linear_impl(x):
    """sigmoid(x.real) + 1j * sigmoid(x.imag) for a complex64 array."""
    # complex64 is interleaved in memory; the real/imag extraction fuses into
    # the pallas operands (allow_input_fusion) and the rebuild is one fused
    # interleave pass — inherent to producing a complex64 result.
    y_re, y_im = _complex_linear_planar_impl(jnp.real(x), jnp.imag(x))
    return lax.complex(y_re, y_im)


complex_linear = jax.jit(_complex_linear_impl)
complex_linear_planar = jax.jit(_complex_linear_planar_impl)


if __name__ == "__main__":
    key = jax.random.PRNGKey(0)
    k_re, k_im = jax.random.split(key)
    shape = (2, 4, 16, 16)  # B, C, H, W
    x_re = jax.random.normal(k_re, shape, dtype=jnp.float32)
    x_im = jax.random.normal(k_im, shape, dtype=jnp.float32)
    x = lax.complex(x_re, x_im)  # complex64 input, matches the module spec

    # Complex-in / complex-out path (module-equivalent interface).
    out = jax.block_until_ready(complex_linear(x))

    ref = lax.complex(jax.nn.sigmoid(x_re), jax.nn.sigmoid(x_im))
    assert out.dtype == jnp.complex64
    assert out.shape == shape
    assert jnp.allclose(out, ref, atol=1e-6), "mismatch vs reference (complex path)"

    # Planar fast path (recommended when the surrounding model stays in f32).
    y_re, y_im = jax.block_until_ready(complex_linear_planar(x_re, x_im))
    assert jnp.allclose(y_re, jax.nn.sigmoid(x_re), atol=1e-6), "mismatch (real plane)"
    assert jnp.allclose(y_im, jax.nn.sigmoid(x_im), atol=1e-6), "mismatch (imag plane)"

    print("KERNEL_OK")
</pallas_src>

<mosaic_0001>
module attributes {stable_mosaic.version = 11 : i64} {
  func.func @_csigmoid_kernel(%arg0: i32, %arg1: memref<2x1024xf32, #tpu.memory_space<vmem>>, %arg2: memref<2x1024xf32, #tpu.memory_space<vmem>>, %arg3: memref<2x1024xf32, #tpu.memory_space<vmem>>, %arg4: memref<2x1024xf32, #tpu.memory_space<vmem>>) attributes {dimension_semantics = [#tpu.dimension_semantics<parallel>], iteration_bounds = array<i64: 1>, scalar_prefetch = 0 : i64, scratch_operands = 0 : i64, tpu.core_type = #tpu.core_type<tc>, window_params = [{transform_indices = @transform_0, window_bounds = array<i64: 2, 1024>}, {transform_indices = @transform_1, window_bounds = array<i64: 2, 1024>}, {transform_indices = @transform_2, window_bounds = array<i64: 2, 1024>}, {transform_indices = @transform_3, window_bounds = array<i64: 2, 1024>}]} {
    %c0 = arith.constant 0 : index
    %c0_0 = arith.constant 0 : index
    %0 = vector.load %arg1[%c0, %c0_0] : memref<2x1024xf32, #tpu.memory_space<vmem>>, vector<2x1024xf32>
    %cst = arith.constant 5.000000e-01 : f32
    %1 = vector.broadcast %cst : f32 to vector<2x1024xf32>
    %2 = arith.mulf %1, %0 : vector<2x1024xf32>
    %3 = math.tanh %2 : vector<2x1024xf32>
    %cst_1 = arith.constant 5.000000e-01 : f32
    %4 = vector.broadcast %cst_1 : f32 to vector<2x1024xf32>
    %5 = arith.mulf %4, %3 : vector<2x1024xf32>
    %cst_2 = arith.constant 5.000000e-01 : f32
    %6 = vector.broadcast %cst_2 : f32 to vector<2x1024xf32>
    %7 = arith.addf %5, %6 : vector<2x1024xf32>
    %c0_3 = arith.constant 0 : index
    %c0_4 = arith.constant 0 : index
    %8 = vector.load %arg3[%c0_3, %c0_4] : memref<2x1024xf32, #tpu.memory_space<vmem>>, vector<2x1024xf32>
    tpu.vector_store %arg3[%c0_3, %c0_4], %7 {strides = array<i32>} : memref<2x1024xf32, #tpu.memory_space<vmem>>, vector<2x1024xf32>,
    %c0_5 = arith.constant 0 : index
    %c0_6 = arith.constant 0 : index
    %9 = vector.load %arg2[%c0_5, %c0_6] : memref<2x1024xf32, #tpu.memory_space<vmem>>, vector<2x1024xf32>
    %cst_7 = arith.constant 5.000000e-01 : f32
    %10 = vector.broadcast %cst_7 : f32 to vector<2x1024xf32>
    %11 = arith.mulf %10, %9 : vector<2x1024xf32>
    %12 = math.tanh %11 : vector<2x1024xf32>
    %cst_8 = arith.constant 5.000000e-01 : f32
    %13 = vector.broadcast %cst_8 : f32 to vector<2x1024xf32>
    %14 = arith.mulf %13, %12 : vector<2x1024xf32>
    %cst_9 = arith.constant 5.000000e-01 : f32
    %15 = vector.broadcast %cst_9 : f32 to vector<2x1024xf32>
    %16 = arith.addf %14, %15 : vector<2x1024xf32>
    %c0_10 = arith.constant 0 : index
    %c0_11 = arith.constant 0 : index
    %17 = vector.load %arg4[%c0_10, %c0_11] : memref<2x1024xf32, #tpu.memory_space<vmem>>, vector<2x1024xf32>
    tpu.vector_store %arg4[%c0_10, %c0_11], %16 {strides = array<i32>} : memref<2x1024xf32, #tpu.memory_space<vmem>>, vector<2x1024xf32>,
    return
  }
  func.func @transform_0(%arg0: i32) -> (i32, i32) {
    %c0_i32 = arith.constant 0 : i32
    %c0_i32_0 = arith.constant 0 : i32
    return %arg0, %c0_i32 : i32, i32
  }
  func.func @transform_1(%arg0: i32) -> (i32, i32) {
    %c0_i32 = arith.constant 0 : i32
    %c0_i32_0 = arith.constant 0 : i32
    return %arg0, %c0_i32 : i32, i32
  }
  func.func @transform_2(%arg0: i32) -> (i32, i32) {
    %c0_i32 = arith.constant 0 : i32
    %c0_i32_0 = arith.constant 0 : i32
    return %arg0, %c0_i32 : i32, i32
  }
  func.func @transform_3(%arg0: i32) -> (i32, i32) {
    %c0_i32 = arith.constant 0 : i32
    %c0_i32_0 = arith.constant 0 : i32
    return %arg0, %c0_i32 : i32, i32
  }
}

</mosaic_0001>

<bundles_post_ra>
// kernel: custom-call.1
= control target key start
LH: loop header
LB: loop body
LE: loop exit
PB: predicated region body
PF: predicated region fallthrough
CT: control target
= control target key end

     0   :  { %s59_s0 = inlined_call_operand.hbm [shape: c64[2,4,16,16], index: 0, kind: input, shape index: {}]   ;;  %s60_s1 = inlined_call_operand.vmem [shape: f32[2,4,16,16], index: 1, kind: output, shape index: {}]  }
   0x1   :  { %s2_s8 = scalar_lea.hbm %s59_s0, 2048 }
   0x2   :  { %3 = vsyncpa [#allocation0], 0  ;;  %s4_s11 = sshll.u32 %s60_s1, 4  ;;  %s34_s14 = scalar_lea.hbm %s59_s0, 4096  ;;  %s5_s11 = int_to_ptr.vmem [resolvable:$true] %s4_s11 }
   0x3   :  { %p11_p0 = scmp.ne.s32.totalorder %s2_s8, %s34_s14  ;;  %p13_p1 = scmp.lt.u32.totalorder %s2_s8, %s59_s0 }
   0x4   :  { %p14_p2 = scmp.lt.u32.totalorder %s34_s14, %s34_s14  ;;  %p16_p4 = scmp.lt.u32.totalorder %s34_s14, %s2_s8 }
   0x6   :  { %p15_p3 = por %p14_p2, %p13_p1 }
   0x8   :  { %p17_p5 = por %p16_p4, %p15_p3 }
   0xa   :  { %p18_p6 = pnand %p17_p5, %p11_p0 }
   0xc   :  { %21 = shalt.err (!%p18_p6)  }
   0xd   :  { %s22_s17 = scalar_lea.vmem %s5_s11, 2048  ;;  %p27_p8 = scmp.lt.s32.totalorder %s5_s11, %s5_s11 }
   0xe   :  { %p23_p7 = scmp.ne.s32.totalorder %s5_s11, %s22_s17  ;;  %p28_p9 = scmp.lt.s32.totalorder %s22_s17, %s22_s17 }
  0x10   :  { %p29_p10 = por %p28_p9, %p27_p8 }
  0x12   :  { %p30_p11 = pnand %p29_p10, %p23_p7 }
  0x14   :  { %33 = shalt.err (!%p30_p11)  }
  0x15   :  { %7 = dma.hbm_to_vmem [thread:$0]  %s2_s8, 2048, %s5_s11, [#allocation0] }
  0x16   :  { %35 = dma.done.wait [#allocation0], 2048  }
  0x17   :  { %36 = vsyncadd [#allocation0], 4294965248 }
  0x18   :  { %9 = vsyncpa [#allocation0], 1 }

// kernel: custom-call
= control target key start
LH: loop header
LB: loop body
LE: loop exit
PB: predicated region body
PF: predicated region fallthrough
CT: control target
= control target key end

     0   :  { %2 = vsyncpa [#allocation0], 0  ;;  %s61_s0 = inlined_call_operand.hbm [shape: c64[2,4,16,16], index: 0, kind: input, shape index: {}]   ;;  %s62_s1 = inlined_call_operand.vmem [shape: f32[2,4,16,16], index: 1, kind: output, shape index: {}]  }
   0x1   :  { %s3_s8 = sshll.u32 %s62_s1, 4  ;;  %s9_s11 = scalar_lea.hbm %s61_s0, 2048  ;;  %s4_s8 = int_to_ptr.vmem [resolvable:$true] %s3_s8 }
   0x2   :  { %p10_p0 = scmp.ne.s32.totalorder %s61_s0, %s9_s11  ;;  %s11_s16 = scalar_lea.hbm %s61_s0, 4096 }
   0x3   :  { %p12_p1 = scmp.lt.u32.totalorder %s11_s16, %s9_s11  ;;  %p13_p2 = scmp.lt.u32.totalorder %s9_s11, %s61_s0 }
   0x5   :  { %p14_p3 = por %p13_p2, %p12_p1 }
   0x7   :  { %p15_p4 = pnand %p14_p3, %p10_p0 }
   0x9   :  { %18 = shalt.err (!%p15_p4)  }
   0xa   :  { %s19_s1 = scalar_lea.vmem %s4_s8, 2048  ;;  %p24_p6 = scmp.lt.s32.totalorder %s4_s8, %s4_s8 }
   0xb   :  { %p20_p5 = scmp.ne.s32.totalorder %s4_s8, %s19_s1  ;;  %p25_p7 = scmp.lt.s32.totalorder %s19_s1, %s19_s1 }
   0xd   :  { %p26_p8 = por %p25_p7, %p24_p6 }
   0xf   :  { %p27_p9 = pnand %p26_p8, %p20_p5 }
  0x11   :  { %30 = shalt.err (!%p27_p9)  }
  0x12   :  { %6 = dma.hbm_to_vmem [thread:$0]  %s61_s0, 2048, %s4_s8, [#allocation0] }
  0x13   :  { %31 = dma.done.wait [#allocation0], 2048  }
  0x14   :  { %32 = vsyncadd [#allocation0], 4294965248 }
  0x15   :  { %8 = vsyncpa [#allocation0], 1 }

// kernel: custom-call.2
= control target key start
LH: loop header
LB: loop body
LE: loop exit
PB: predicated region body
PF: predicated region fallthrough
CT: control target
= control target key end

     0   :  { %s126_s0 = inlined_call_operand.vmem [shape: f32[2,4,16,16], index: 0, kind: input, shape index: {}]   ;;  %s127_s1 = inlined_call_operand.vmem [shape: f32[2,4,16,16], index: 1, kind: input, shape index: {}]   ;;  %s128_s2 = inlined_call_operand.hbm [shape: c64[2,4,16,16], index: 2, kind: output, shape index: {}]  }
   0x1   :  { %s87_s11 = scalar_lea.hbm %s128_s2, 2048 }
   0x2   :  { %4 = vsyncpa [#allocation0], 0  ;;  %s5_s14 = sshll.u32 %s126_s0, 4  ;;  %s6_s14 = int_to_ptr.vmem [resolvable:$true] %s5_s14 }
   0x3   :  { %s18_s15 = scalar_lea.vmem %s6_s14, 2048  ;;  %p23_p1 = scmp.lt.s32.totalorder %s6_s14, %s6_s14 }
   0x4   :  { %p19_p0 = scmp.ne.s32.totalorder %s6_s14, %s18_s15  ;;  %p24_p2 = scmp.lt.s32.totalorder %s18_s15, %s18_s15 }
   0x6   :  { %p25_p3 = por %p24_p2, %p23_p1 }
   0x8   :  { %p26_p4 = pnand %p25_p3, %p19_p0 }
   0xa   :  { %29 = shalt.err (!%p26_p4)  }
   0xb   :  { %p31_p5 = scmp.ne.s32.totalorder %s128_s2, %s87_s11  ;;  %s32_s0 = scalar_lea.hbm %s128_s2, 4096 }
   0xc   :  { %p33_p6 = scmp.lt.u32.totalorder %s32_s0, %s87_s11  ;;  %p34_p7 = scmp.lt.u32.totalorder %s87_s11, %s128_s2 }
   0xe   :  { %p35_p8 = por %p34_p7, %p33_p6 }
  0x10   :  { %p36_p9 = pnand %p35_p8, %p31_p5 }
  0x12   :  { %39 = shalt.err (!%p36_p9)  }
  0x13   :  { %8 = dma.vmem_to_hbm [thread:$0]  %s6_s14, 2048, %s128_s2, [#allocation0] }
  0x14   :  { %65 = dma.done.wait [#allocation0], 2048  }
  0x15   :  { %66 = vsyncadd [#allocation0], 4294965248 }
  0x16   :  { %10 = vsyncpa [#allocation0], 1 }
  0x17   :  { %11 = vsyncpa [#allocation1], 0  ;;  %s12_s28 = sshll.u32 %s127_s1, 4  ;;  %s13_s28 = int_to_ptr.vmem [resolvable:$true] %s12_s28 }
  0x18   :  { %s40_s29 = scalar_lea.vmem %s13_s28, 2048  ;;  %p45_p11 = scmp.lt.s32.totalorder %s13_s28, %s13_s28 }
  0x19   :  { %p41_p10 = scmp.ne.s32.totalorder %s13_s28, %s40_s29  ;;  %p46_p12 = scmp.lt.s32.totalorder %s40_s29, %s40_s29 }
  0x1b   :  { %p47_p13 = por %p46_p12, %p45_p11 }
  0x1d   :  { %p48_p0 = pnand %p47_p13, %p41_p10 }
  0x1f   :  { %51 = shalt.err (!%p48_p0)  }
  0x20   :  { %p53_p1 = scmp.ne.s32.totalorder %s87_s11, %s32_s0  ;;  %p56_p2 = scmp.lt.u32.totalorder %s32_s0, %s32_s0 }
  0x22   :  { %p57_p3 = por %p56_p2, %p34_p7 }
  0x24   :  { %p59_p4 = por %p57_p3, %p33_p6 }
  0x26   :  { %p60_p5 = pnand %p59_p4, %p53_p1 }
  0x28   :  { %63 = shalt.err (!%p60_p5)  }
  0x29   :  { %15 = dma.vmem_to_hbm [thread:$0]  %s13_s28, 2048, %s87_s11, [#allocation1] }
  0x2a   :  { %67 = dma.done.wait [#allocation1], 2048  }
  0x2b   :  { %68 = vsyncadd [#allocation1], 4294965248 }
  0x2c   :  { %17 = vsyncpa [#allocation1], 1 }

// kernel: _complex_linear_impl.1
= control target key start
LH: loop header
LB: loop body
LE: loop exit
PB: predicated region body
PF: predicated region fallthrough
CT: control target
= control target key end

     0   :  { %s97_s0 = inlined_call_operand.vmem [shape: f32[2,1024], index: 0, kind: input, shape index: {}]   ;;  %s98_s1 = inlined_call_operand.vmem [shape: f32[2,1024], index: 1, kind: input, shape index: {}]   ;;  %s99_s2 = inlined_call_operand.vmem [shape: f32[2,1024], index: 2, kind: output, shape index: {0}]   ;;  %s100_s3 = inlined_call_operand.vmem [shape: f32[2,1024], index: 3, kind: output, shape index: {1}]  }
   0x1   :  { %v13_v0 = vld [vmem:[%s97_s0] sm:$0xff]  ;;  %v14_v1 = vld [vmem:[%s97_s0 + $0x8] sm:$0xff] }
   0x2   :  { %v25_v2 = vld [vmem:[%s98_s1] sm:$0xff]  ;;  %v15_v3 = vmul.f32 0.5, %v13_v0  ;;  %v16_v4 = vmul.f32 0.5, %v14_v1  ;;  %v26_v6 = vld [vmem:[%s98_s1 + $0x8] sm:$0xff] }
   0x3   :  { %v27_v5 = vmul.f32 0.5, %v25_v2  ;;  %v28_v7 = vmul.f32 0.5, %v26_v6 }
   0x4   :  { %45 = vtanh.f32 %v15_v3 }
   0x5   :  { %47 = vtanh.f32 %v16_v4 }
   0x6   :  { %49 = vtanh.f32 %v27_v5 }
   0x7   :  { %51 = vtanh.f32 %v28_v7 }
   0xe   :  { %v46_v8 = vpop.eup %45 }
   0xf   :  { %v48_v9 = vpop.eup %47  ;;  %v19_v10 = vmul.f32 0.5, %v46_v8 }
  0x10   :  { %v50_v11 = vpop.eup %49  ;;  %v20_v12 = vmul.f32 0.5, %v48_v9 }
  0x11   :  { %v52_v13 = vpop.eup %51  ;;  %v21_v14 = vadd.f32 0.5, %v19_v10  ;;  %v31_v15 = vmul.f32 0.5, %v50_v11 }
  0x12   :  { %v22_v16 = vadd.f32 0.5, %v20_v12  ;;  %v32_v17 = vmul.f32 0.5, %v52_v13 }
  0x13   :  { %23 = vst [vmem:[%s99_s2] sm:$0xff] %v21_v14  ;;  %v33_v18 = vadd.f32 0.5, %v31_v15 }
  0x14   :  { %24 = vst [vmem:[%s99_s2 + $0x8] sm:$0xff] %v22_v16  ;;  %v34_v19 = vadd.f32 0.5, %v32_v17 }
  0x15   :  { %35 = vst [vmem:[%s100_s3] sm:$0xff] %v33_v18 }
  0x16   :  { %36 = vst [vmem:[%s100_s3 + $0x8] sm:$0xff] %v34_v19 }

</bundles_post_ra>
